<compile_context>
chip_gen: v6e
topology: v6e:2x2x1
jax: 0.10.0
libtpu: 0.0.40
codegen_flags: <defaults>
</compile_context>

<pallas_src>
import math

import jax
import jax.numpy as jnp
from jax import lax
from jax.experimental import pallas as pl
from jax.experimental.pallas import tpu as pltpu

IN_FEATURES = 500
OUT_FEATURES = 500
IN_PAD = 512      # lane-dense padding (multiple of 128)
OUT_PAD = 512
DROP_P = 0.044715
KEEP_SCALE = 1.0 / (1.0 - DROP_P)
GELU_C = 0.7978845608028654
# drop iff hash_u32 < round(p * 2^32)  -> integer-domain Bernoulli test
DROP_THRESHOLD_U32 = int(round(DROP_P * (1 << 32)))


def model_kernel(seed_ref, x_ref, w_ref, b_ref, o_ref):
    # ---- linear: v1 = x @ W + b (MXU, f32 accumulation) ----
    v1 = jnp.dot(x_ref[...].astype(w_ref.dtype), w_ref[...],
                 preferred_element_type=jnp.float32)
    v1 = v1 + b_ref[...]                    # bias broadcast over batch rows

    v2 = v1 * jnp.float32(0.5)
    cube = v1 * v1 * v1

    # ---- dropout(cube, p): stateless per-element uint32 hash ----
    tm, tn = o_ref.shape
    seed = seed_ref[0].astype(jnp.uint32)
    pid = pl.program_id(0).astype(jnp.uint32)
    row = lax.broadcasted_iota(jnp.uint32, (tm, tn), 0)
    col = lax.broadcasted_iota(jnp.uint32, (tm, tn), 1)
    # globally unique element counter (aware of batch tiling), mixed with seed
    h = (pid * jnp.uint32(tm) + row) * jnp.uint32(tn) + col
    h = h + seed * jnp.uint32(0x9E3779B9)
    # murmur3 fmix32 finalizer
    h = h ^ (h >> jnp.uint32(16))
    h = h * jnp.uint32(0x85EBCA6B)
    h = h ^ (h >> jnp.uint32(13))
    h = h * jnp.uint32(0xC2B2AE35)
    h = h ^ (h >> jnp.uint32(16))
    keep = h >= jnp.uint32(DROP_THRESHOLD_U32)
    v3 = jnp.where(keep, cube * jnp.float32(KEEP_SCALE), jnp.float32(0.0))

    # ---- v4..v7 ----
    v4 = v3 * jnp.float32(GELU_C)
    v6 = jnp.tanh(v4) + jnp.float32(1.0)
    o_ref[...] = (v2 * v6).astype(o_ref.dtype)


def model_forward(x, w_out_in, bias, seed=0, *,
                  weight_dtype=jnp.bfloat16, block_m=128):
    """x: (B, 500) f32; w_out_in: (500, 500) f32 in PyTorch (out, in) layout;
    bias: (500,) f32. Returns (B, 500) f32."""
    B = x.shape[0]
    assert x.shape[1] == IN_FEATURES

    # Lane-dense padding 500 -> 512 (zero pads contribute nothing to the GEMM;
    # padded output columns are sliced away below).
    x_p = jnp.pad(x, ((0, 0), (0, IN_PAD - IN_FEATURES)))
    w_p = jnp.pad(w_out_in.T,
                  ((0, IN_PAD - IN_FEATURES), (0, OUT_PAD - OUT_FEATURES)))
    w_p = w_p.astype(weight_dtype)          # halve the dominant HBM load
    b_p = jnp.pad(bias.reshape(1, OUT_FEATURES),
                  ((0, 0), (0, OUT_PAD - OUT_FEATURES))).astype(jnp.float32)

    tm = min(block_m, B)                    # degenerates to B (=1 step) for small B
    grid = (pl.cdiv(B, tm),)

    out = pl.pallas_call(
        model_kernel,
        out_shape=jax.ShapeDtypeStruct((B, OUT_PAD), jnp.float32),
        grid=grid,
        in_specs=[
            pl.BlockSpec(memory_space=pltpu.MemorySpace.SMEM),   # seed scalar
            pl.BlockSpec((tm, IN_PAD), lambda i: (i, 0)),        # x batch tile
            pl.BlockSpec((IN_PAD, OUT_PAD), lambda i: (0, 0)),   # W (resident)
            pl.BlockSpec((1, OUT_PAD), lambda i: (0, 0)),        # b (resident)
        ],
        out_specs=pl.BlockSpec((tm, OUT_PAD), lambda i: (i, 0)),
        compiler_params=pltpu.CompilerParams(
            dimension_semantics=("parallel",),
        ),
    )(jnp.array([seed], dtype=jnp.int32), x_p, w_p, b_p)

    return out[:, :OUT_FEATURES]


if __name__ == "__main__":
    key = jax.random.PRNGKey(0)
    kx, kw, kb = jax.random.split(key, 3)

    # Deterministic parameter init (PyTorch nn.Linear-like uniform bound).
    bound = 1.0 / math.sqrt(IN_FEATURES)
    w_out_in = jax.random.uniform(
        kw, (OUT_FEATURES, IN_FEATURES), jnp.float32, -bound, bound)
    bias = jax.random.uniform(kb, (OUT_FEATURES,), jnp.float32, -bound, bound)

    # Input matches the module's x1 = torch.randn(1, 500)
    x = jax.random.normal(kx, (1, IN_FEATURES), dtype=jnp.float32)

    out = model_forward(x, w_out_in, bias, seed=0)
    jax.block_until_ready(out)
    assert out.shape == (1, OUT_FEATURES) and out.dtype == jnp.float32
    assert bool(jnp.all(jnp.isfinite(out)))
    print("KERNEL_OK")
</pallas_src>

<mosaic_0001>
module attributes {stable_mosaic.version = 11 : i64} {
  func.func @model_kernel(%arg0: i32, %arg1: memref<1xi32, #tpu.memory_space<smem>>, %arg2: memref<1x512xf32, #tpu.memory_space<vmem>>, %arg3: memref<512x512xbf16, #tpu.memory_space<vmem>>, %arg4: memref<1x512xf32, #tpu.memory_space<vmem>>, %arg5: memref<1x512xf32, #tpu.memory_space<vmem>>) attributes {dimension_semantics = [#tpu.dimension_semantics<parallel>], iteration_bounds = array<i64: 1>, scalar_prefetch = 0 : i64, scratch_operands = 0 : i64, tpu.core_type = #tpu.core_type<tc>, window_params = [{transform_indices = @transform_0, window_bounds = array<i64: 1>}, {transform_indices = @transform_1, window_bounds = array<i64: 1, 512>}, {pipeline_mode = #tpu.pipeline_mode<synchronous>, transform_indices = @transform_2, window_bounds = array<i64: 512, 512>}, {pipeline_mode = #tpu.pipeline_mode<synchronous>, transform_indices = @transform_3, window_bounds = array<i64: 1, 512>}, {transform_indices = @transform_4, window_bounds = array<i64: 1, 512>}]} {
    %c0 = arith.constant 0 : index
    %c0_0 = arith.constant 0 : index
    %0 = vector.load %arg2[%c0, %c0_0] : memref<1x512xf32, #tpu.memory_space<vmem>>, vector<1x512xf32>
    %1 = arith.truncf %0 : vector<1x512xf32> to vector<1x512xbf16>
    %c0_1 = arith.constant 0 : index
    %c0_2 = arith.constant 0 : index
    %2 = vector.load %arg3[%c0_1, %c0_2] : memref<512x512xbf16, #tpu.memory_space<vmem>>, vector<512x512xbf16>
    %cst = arith.constant dense<0.000000e+00> : vector<1x512xf32>
    %3 = tpu.matmul %1, %2, %cst {dimension_numbers = #tpu.dot_dimension_numbers<[1], [0], [0], [1], [0, 0, 1, 1], [], []>} : vector<1x512xbf16>, vector<512x512xbf16>, vector<1x512xf32> -> vector<1x512xf32>
    %c0_3 = arith.constant 0 : index
    %c0_4 = arith.constant 0 : index
    %4 = vector.load %arg4[%c0_3, %c0_4] : memref<1x512xf32, #tpu.memory_space<vmem>>, vector<1x512xf32>
    %5 = arith.addf %3, %4 : vector<1x512xf32>
    %cst_5 = arith.constant 5.000000e-01 : f32
    %6 = vector.broadcast %cst_5 : f32 to vector<1x512xf32>
    %7 = arith.mulf %5, %6 : vector<1x512xf32>
    %8 = arith.mulf %5, %5 : vector<1x512xf32>
    %9 = arith.mulf %8, %5 : vector<1x512xf32>
    %c0_6 = arith.constant 0 : index
    %10 = memref.load %arg1[%c0_6] : memref<1xi32, #tpu.memory_space<smem>>
    %11 = tpu.iota {dimensions = array<i32: 0>} : vector<1x512xi32>
    %12 = tpu.iota {dimensions = array<i32: 1>} : vector<1x512xi32>
    %c1_i32 = arith.constant 1 : i32
    %13 = arith.muli %arg0, %c1_i32 : i32
    %14 = vector.broadcast %13 : i32 to vector<1x512xi32>
    %15 = arith.addi %14, %11 : vector<1x512xi32>
    %c512_i32 = arith.constant 512 : i32
    %16 = vector.broadcast %c512_i32 : i32 to vector<1x512xi32>
    %17 = arith.muli %15, %16 : vector<1x512xi32>
    %18 = arith.addi %17, %12 : vector<1x512xi32>
    %c-1640531527_i32 = arith.constant -1640531527 : i32
    %19 = arith.muli %10, %c-1640531527_i32 : i32
    %20 = vector.broadcast %19 : i32 to vector<1x512xi32>
    %21 = arith.addi %18, %20 : vector<1x512xi32>
    %c16_i32 = arith.constant 16 : i32
    %22 = vector.broadcast %c16_i32 : i32 to vector<1x512xi32>
    %23 = arith.shrui %21, %22 : vector<1x512xi32>
    %24 = arith.xori %21, %23 : vector<1x512xi32>
    %c-2048144789_i32 = arith.constant -2048144789 : i32
    %25 = vector.broadcast %c-2048144789_i32 : i32 to vector<1x512xi32>
    %26 = arith.muli %24, %25 : vector<1x512xi32>
    %c13_i32 = arith.constant 13 : i32
    %27 = vector.broadcast %c13_i32 : i32 to vector<1x512xi32>
    %28 = arith.shrui %26, %27 : vector<1x512xi32>
    %29 = arith.xori %26, %28 : vector<1x512xi32>
    %c-1028477387_i32 = arith.constant -1028477387 : i32
    %30 = vector.broadcast %c-1028477387_i32 : i32 to vector<1x512xi32>
    %31 = arith.muli %29, %30 : vector<1x512xi32>
    %c16_i32_7 = arith.constant 16 : i32
    %32 = vector.broadcast %c16_i32_7 : i32 to vector<1x512xi32>
    %33 = arith.shrui %31, %32 : vector<1x512xi32>
    %34 = arith.xori %31, %33 : vector<1x512xi32>
    %c192049463_i32 = arith.constant 192049463 : i32
    %35 = vector.broadcast %c192049463_i32 : i32 to vector<1x512xi32>
    %36 = arith.cmpi uge, %34, %35 : vector<1x512xi32>
    %cst_8 = arith.constant 1.046808 : f32
    %37 = vector.broadcast %cst_8 : f32 to vector<1x512xf32>
    %38 = arith.mulf %9, %37 : vector<1x512xf32>
    %cst_9 = arith.constant 0.000000e+00 : f32
    %39 = vector.broadcast %cst_9 : f32 to vector<1x512xf32>
    %40 = arith.select %36, %38, %39 : vector<1x512xi1>, vector<1x512xf32>
    %cst_10 = arith.constant 0.797884583 : f32
    %41 = vector.broadcast %cst_10 : f32 to vector<1x512xf32>
    %42 = arith.mulf %40, %41 : vector<1x512xf32>
    %43 = math.tanh %42 : vector<1x512xf32>
    %cst_11 = arith.constant 1.000000e+00 : f32
    %44 = vector.broadcast %cst_11 : f32 to vector<1x512xf32>
    %45 = arith.addf %43, %44 : vector<1x512xf32>
    %46 = arith.mulf %7, %45 : vector<1x512xf32>
    %c0_12 = arith.constant 0 : index
    %c0_13 = arith.constant 0 : index
    %47 = vector.load %arg5[%c0_12, %c0_13] : memref<1x512xf32, #tpu.memory_space<vmem>>, vector<1x512xf32>
    tpu.vector_store %arg5[%c0_12, %c0_13], %46 {strides = array<i32>} : memref<1x512xf32, #tpu.memory_space<vmem>>, vector<1x512xf32>,
    return
  }
  func.func @transform_0(%arg0: i32) -> i32 {
    %c0_i32 = arith.constant 0 : i32
    %c0_i32_0 = arith.constant 0 : i32
    return %c0_i32 : i32
  }
  func.func @transform_1(%arg0: i32) -> (i32, i32) {
    %c0_i32 = arith.constant 0 : i32
    %c0_i32_0 = arith.constant 0 : i32
    return %arg0, %c0_i32 : i32, i32
  }
  func.func @transform_2(%arg0: i32) -> (i32, i32) {
    %c0_i32 = arith.constant 0 : i32
    %c0_i32_0 = arith.constant 0 : i32
    %c0_i32_1 = arith.constant 0 : i32
    return %c0_i32, %c0_i32_0 : i32, i32
  }
  func.func @transform_3(%arg0: i32) -> (i32, i32) {
    %c0_i32 = arith.constant 0 : i32
    %c0_i32_0 = arith.constant 0 : i32
    %c0_i32_1 = arith.constant 0 : i32
    return %c0_i32, %c0_i32_0 : i32, i32
  }
  func.func @transform_4(%arg0: i32) -> (i32, i32) {
    %c0_i32 = arith.constant 0 : i32
    %c0_i32_0 = arith.constant 0 : i32
    return %arg0, %c0_i32 : i32, i32
  }
}

</mosaic_0001>

<bundles_post_ra>
// kernel: tpu_custom_call.1
= control target key start
LH: loop header
LB: loop body
LE: loop exit
PB: predicated region body
PF: predicated region fallthrough
CT: control target
= control target key end

     0   :  { %10 = vsyncpa [#allocation4], 0  ;;  %s1673_s0 = inlined_call_operand.<no memory space> [shape: s32[1], index: 0, kind: input, shape index: {}]   ;;  %s1674_s1 = inlined_call_operand.hbm [shape: f32[1,512], index: 1, kind: input, shape index: {}]   ;;  %s1675_s2 = inlined_call_operand.hbm [shape: bf16[512,512], index: 2, kind: input, shape index: {}]   ;;  %s1676_s3 = inlined_call_operand.vmem [shape: f32[1,512], index: 3, kind: input, shape index: {}]   ;;  %s1677_s4 = inlined_call_operand.hbm [shape: f32[1,512], index: 4, kind: output, shape index: {}]  }
   0x1   :  { %11 = vsyncpa [#allocation7], 0 }
   0x2   :  { %12 = vsyncpa [#allocation5], 0  ;;  %s1568_s15 = smov [#allocation3]   ;;  %s1569_s17 = smov [#allocation6]  }
   0x3   :  { %s21_s16 = sshll.u32 %s1568_s15, 4  ;;  %s30_s18 = sshll.u32 %s1569_s17, 4  ;;  %s22_s16 = int_to_ptr.vmem [resolvable:$true] %s21_s16  ;;  %s31_s18 = int_to_ptr.vmem [resolvable:$true] %s30_s18 }
   0x4   :  { %s1510_s19 = scalar_lea.vmem %s22_s16, 64  ;;  %p1515_p1 = scmp.lt.s32.totalorder %s22_s16, %s22_s16 }
   0x5   :  { %p1511_p0 = scmp.ne.s32.totalorder %s22_s16, %s1510_s19  ;;  %p1516_p2 = scmp.lt.s32.totalorder %s1510_s19, %s1510_s19 }
   0x7   :  { %p1517_p3 = por %p1516_p2, %p1515_p1 }
   0x9   :  { %p1518_p4 = pnand %p1517_p3, %p1511_p0 }
   0xb   :  { %1521 = shalt.err (!%p1518_p4)
}
   0xc   :  { %24 = dma.hbm_to_vmem [thread:$0]  %s1674_s1, 64, %s22_s16, [#allocation4]  }
   0xd   :  { %s1530_s22 = scalar_lea.vmem %s31_s18, 16384  ;;  %p1535_p6 = scmp.lt.s32.totalorder %s31_s18, %s31_s18 }
   0xe   :  { %p1531_p5 = scmp.ne.s32.totalorder %s31_s18, %s1530_s22  ;;  %p1536_p7 = scmp.lt.s32.totalorder %s1530_s22, %s1530_s22 }
  0x10   :  { %p1537_p8 = por %p1536_p7, %p1535_p6 }
  0x12   :  { %p1538_p9 = pnand %p1537_p8, %p1531_p5 }
  0x14   :  { %1541 = shalt.err (!%p1538_p9)
}
  0x15   :  { %s1570_s23 = smov 256   ;;  %s1571_s24 = smov 16  }
  0x16   :  { %36 = dma.hbm_to_vmem [thread:$0]  %s1675_s2, 16384, %s31_s18, [#allocation7], %s1570_s23, %s1570_s23, %s1571_s24  }
  0x17   :  { %1562 = dma.done.wait [#allocation4], 64  }
  0x18   :  { %1563 = vsyncadd [#allocation4], 4294967232 }
  0x19   :  { %1564 = dma.done.wait [#allocation7], 16384  }
  0x1a   :  { %1565 = vsyncadd [#allocation7], 4294950912  ;;  %v1302_v0 = vld [vmem:[#allocation6 + $0xe4] ss:$16 sps:$4 sm:$0xff]   ;;  %v1306_v2 = vld [vmem:[#allocation6 + $0xe0] ss:$16 sps:$4 sm:$0xff]   ;;  %v47_v36 = vlaneseq }
  0x1b   :  { %v1304_v1 = vld [vmem:[#allocation6 + $0x2e4] ss:$16 sps:$4 sm:$0xff]   ;;  %861 = vmatprep.subr.bf16.mxu0 %v1302_v0  ;;  %v1307_v3 = vld [vmem:[#allocation6 + $0x2e0] ss:$16 sps:$4 sm:$0xff]   ;;  %v45_v50 = vld [vmem:[#allocation3] sm:$0xf] }
  0x1c   :  { %902 = vmatprep.subr.bf16.mxu1 %v1304_v1  ;;  %v1308_v4 = vld [vmem:[#allocation6 + $0xc4] ss:$16 sps:$4 sm:$0xff]   ;;  %862 = vmatpush1.bf16.msra.mxu0 %v1306_v2  ;;  %v1312_v6 = vld [vmem:[#allocation6 + $0xc0] ss:$16 sps:$4 sm:$0xff]   ;;  %v1606_v40 = vshrl.u32 %v47_v36, 7  ;;  %vm1149_vm4 = vcmp.lt.s32.totalorder %v47_v36, 512 }
  0x1d   :  { %903 = vmatpush1.bf16.msra.mxu1 %v1307_v3  ;;  %v1310_v5 = vld [vmem:[#allocation6 + $0x2c4] ss:$16 sps:$4 sm:$0xff]   ;;  %863 = vmatprep.subr.bf16.mxu0 %v1308_v4  ;;  %v1313_v7 = vld [vmem:[#allocation6 + $0x2c0] ss:$16 sps:$4 sm:$0xff]   ;;  %s1052_s27 = smul.u32 2654435769, %s1673_s0 }
  0x1e   :  { %904 = vmatprep.subr.bf16.mxu1 %v1310_v5  ;;  %v1314_v8 = vld [vmem:[#allocation6 + $0xa4] ss:$16 sps:$4 sm:$0xff]   ;;  %v1318_v10 = vld [vmem:[#allocation6 + $0xa0] ss:$16 sps:$4 sm:$0xff]   ;;  %v53_v46 = vsub.s32 1, %v1606_v40  ;;  %v61_v47 = vsub.s32 3, %v1606_v40 }
  0x1f   :  { %v1316_v9 = vld [vmem:[#allocation6 + $0x2a4] ss:$16 sps:$4 sm:$0xff]   ;;  %v1319_v11 = vld [vmem:[#allocation6 + $0x2a0] ss:$16 sps:$4 sm:$0xff]   ;;  %v49_v4 = vsub.s32 0, %v1606_v40  ;;  %v57_v5 = vsub.s32 2, %v1606_v40 }
  0x20   :  { %864 = vmatpush1.bf16.msra.mxu0 %v1312_v6  ;;  %v1320_v12 = vld [vmem:[#allocation6 + $0x84] ss:$16 sps:$4 sm:$0xff]   ;;  %v1324_v14 = vld [vmem:[#allocation6 + $0x80] ss:$16 sps:$4 sm:$0xff]   ;;  %v54_v52 = vrot.slane %v45_v50, %v53_v46  ;;  %v62_v53 = vrot.slane %v45_v50, %v61_v47 }
  0x21   :  { %905 = vmatpush1.bf16.msra.mxu1 %v1313_v7  ;;  %865 = vmatprep.subr.bf16.mxu0 %v1314_v8  ;;  %v1322_v13 = vld [vmem:[#allocation6 + $0x284] ss:$16 sps:$4 sm:$0xff]   ;;  %v1325_v15 = vld [vmem:[#allocation6 + $0x280] ss:$16 sps:$4 sm:$0xff]  }
  0x22   :  { %906 = vmatprep.subr.bf16.mxu1 %v1316_v9  ;;  %v1326_v16 = vld [vmem:[#allocation6 + $0x64] ss:$16 sps:$4 sm:$0xff]   ;;  %v1330_v18 = vld [vmem:[#allocation6 + $0x60] ss:$16 sps:$4 sm:$0xff]   ;;  %v68_v57 = vpack.c.bf16 %v54_v52, %v54_v52  ;;  %v70_v58 = vpack.c.bf16 %v62_v53, %v62_v53  ;;  %v1451_v52 = vld [vmem:[#allocation6 + $0x3ec] ss:$16 sps:$4 sm:$0xff]  }
  0x23   :  { %v1328_v17 = vld [vmem:[#allocation6 + $0x264] ss:$16 sps:$4 sm:$0xff]   ;;  %v1331_v19 = vld [vmem:[#allocation6 + $0x260] ss:$16 sps:$4 sm:$0xff]   ;;  %v1446_v53 = vld [vmem:[#allocation6 + $0x1e8] ss:$16 sps:$4 sm:$0xff]  }
  0x24   :  { %866 = vmatpush1.bf16.msra.mxu0 %v1318_v10  ;;  %v1332_v20 = vld [vmem:[#allocation6 + $0x44] ss:$16 sps:$4 sm:$0xff]   ;;  %v1336_v22 = vld [vmem:[#allocation6 + $0x40] ss:$16 sps:$4 sm:$0xff]   ;;  %893 = vmatprep.mubr.bf16.mxu0 %v68_v57  ;;  %v50_v10 = vrot.slane %v45_v50, %v49_v4 }
  0x25   :  { %907 = vmatpush1.bf16.msra.mxu1 %v1319_v11  ;;  %867 = vmatprep.subr.bf16.mxu0 %v1320_v12  ;;  %v1334_v21 = vld [vmem:[#allocation6 + $0x244] ss:$16 sps:$4 sm:$0xff]   ;;  %v1337_v23 = vld [vmem:[#allocation6 + $0x240] ss:$16 sps:$4 sm:$0xff]   ;;  %v58_v11 = vrot.slane %v45_v50, %v57_v5  ;;  %v1443_v50 = vld [vmem:[#allocation6 + $0x208] ss:$16 sps:$4 sm:$0xff]  }
  0x26   :  { %908 = vmatprep.subr.bf16.mxu1 %v1322_v13  ;;  %v1338_v24 = vld [vmem:[#allocation6 + $0x24] ss:$16 sps:$4 sm:$0xff]   ;;  %v1342_v26 = vld [vmem:[#allocation6 + $0x20] ss:$16 sps:$4 sm:$0xff]   ;;  %934 = vmatprep.mubr.bf16.mxu1 %v70_v58  ;;  %v1400_v13 = vld [vmem:[#allocation6 + $0xec] ss:$16 sps:$4 sm:$0xff]  }
  0x27   :  { %v1340_v25 = vld [vmem:[#allocation6 + $0x224] ss:$16 sps:$4 sm:$0xff]   ;;  %v1343_v27 = vld [vmem:[#allocation6 + $0x220] ss:$16 sps:$4 sm:$0xff]  }
  0x28   :  { %868 = vmatpush1.bf16.msra.mxu0 %v1324_v14  ;;  %v1344_v28 = vld [vmem:[#allocation6 + $0x4] ss:$16 sps:$4 sm:$0xff]   ;;  %v1348_v30 = vld [vmem:[#allocation6] ss:$16 sps:$4 sm:$0xff]   ;;  %v1403_v14 = vld [vmem:[#allocation6 + $0x2ec] ss:$16 sps:$4 sm:$0xff]  }
  0x29   :  { %909 = vmatpush1.bf16.msra.mxu1 %v1325_v15  ;;  %869 = vmatprep.subr.bf16.mxu0 %v1326_v16  ;;  %v1346_v29 = vld [vmem:[#allocation6 + $0x204] ss:$16 sps:$4 sm:$0xff]   ;;  %v1349_v31 = vld [vmem:[#allocation6 + $0x200] ss:$16 sps:$4 sm:$0xff]   ;;  %v1620_v15 = vpack.c.bf16 %v50_v10, %v50_v10  ;;  %v1622_v16 = vpack.c.bf16 %v58_v11, %v58_v11  ;;  %v1481_v10 = vld [vmem:[#allocation6 + $0x34c] ss:$16 sps:$4 sm:$0xff]  }
  0x2a   :  { %910 = vmatprep.subr.bf16.mxu1 %v1328_v17  ;;  %v1350_v32 = vld [vmem:[#allocation6 + $0x1e4] ss:$16 sps:$4 sm:$0xff]   ;;  %v1354_v34 = vld [vmem:[#allocation6 + $0x1e0] ss:$16 sps:$4 sm:$0xff]   ;;  %v1398_v17 = vld [vmem:[#allocation6 + $0xe8] ss:$16 sps:$4 sm:$0xff]  }
  0x2b   :  { %v1352_v33 = vld [vmem:[#allocation6 + $0x3e4] ss:$16 sps:$4 sm:$0xff]   ;;  %v1355_v35 = vld [vmem:[#allocation6 + $0x3e0] ss:$16 sps:$4 sm:$0xff]   ;;  %v1476_v11 = vld [vmem:[#allocation6 + $0x148] ss:$16 sps:$4 sm:$0xff]  }
  0x2c   :  { %870 = vmatpush1.bf16.msra.mxu0 %v1330_v18  ;;  %v1356_v37 = vld [vmem:[#allocation6 + $0x1c4] ss:$16 sps:$4 sm:$0xff]   ;;  %v1360_v39 = vld [vmem:[#allocation6 + $0x1c0] ss:$16 sps:$4 sm:$0xff]   ;;  %v1401_v18 = vld [vmem:[#allocation6 + $0x2e8] ss:$16 sps:$4 sm:$0xff]  }
  0x2d   :  { %911 = vmatpush1.bf16.msra.mxu1 %v1331_v19  ;;  %871 = vmatprep.subr.bf16.mxu0 %v1332_v20  ;;  %v1358_v38 = vld [vmem:[#allocation6 + $0x3c4] ss:$16 sps:$4 sm:$0xff]   ;;  %v1361_v41 = vld [vmem:[#allocation6 + $0x3c0] ss:$16 sps:$4 sm:$0xff]   ;;  %v1406_v19 = vld [vmem:[#allocation6 + $0xcc] ss:$16 sps:$4 sm:$0xff]  }
  0x2e   :  { %912 = vmatprep.subr.bf16.mxu1 %v1334_v21  ;;  %v1362_v42 = vld [vmem:[#allocation6 + $0x1a4] ss:$16 sps:$4 sm:$0xff]   ;;  %v1366_v44 = vld [vmem:[#allocation6 + $0x1a0] ss:$16 sps:$4 sm:$0xff]   ;;  %v1409_v20 = vld [vmem:[#allocation6 + $0x2cc] ss:$16 sps:$4 sm:$0xff]  }
  0x2f   :  { %v1364_v43 = vld [vmem:[#allocation6 + $0x3a4] ss:$16 sps:$4 sm:$0xff]   ;;  %v1367_v45 = vld [vmem:[#allocation6 + $0x3a0] ss:$16 sps:$4 sm:$0xff]   ;;  %v1404_v21 = vld [vmem:[#allocation6 + $0xc8] ss:$16 sps:$4 sm:$0xff]  }
  0x30   :  { %872 = vmatpush1.bf16.msra.mxu0 %v1336_v22  ;;  %v1368_v48 = vld [vmem:[#allocation6 + $0x184] ss:$16 sps:$4 sm:$0xff]   ;;  %v1372_v51 = vld [vmem:[#allocation6 + $0x180] ss:$16 sps:$4 sm:$0xff]   ;;  %v1407_v22 = vld [vmem:[#allocation6 + $0x2c8] ss:$16 sps:$4 sm:$0xff]  }
  0x31   :  { %913 = vmatpush1.bf16.msra.mxu1 %v1337_v23  ;;  %873 = vmatprep.subr.bf16.mxu0 %v1338_v24  ;;  %v1370_v49 = vld [vmem:[#allocation6 + $0x384] ss:$16 sps:$4 sm:$0xff]   ;;  %v1373_v54 = vld [vmem:[#allocation6 + $0x380] ss:$16 sps:$4 sm:$0xff]   ;;  %v1412_v23 = vld [vmem:[#allocation6 + $0xac] ss:$16 sps:$4 sm:$0xff]  }
  0x32   :  { %914 = vmatprep.subr.bf16.mxu1 %v1340_v25  ;;  %v1374_v55 = vld [vmem:[#allocation6 + $0x164] ss:$16 sps:$4 sm:$0xff]   ;;  %v1378_v59 = vld [vmem:[#allocation6 + $0x160] ss:$16 sps:$4 sm:$0xff]   ;;  %v1415_v24 = vld [vmem:[#allocation6 + $0x2ac] ss:$16 sps:$4 sm:$0xff]  }
  0x33   :  { %v1376_v56 = vld [vmem:[#allocation6 + $0x364] ss:$16 sps:$4 sm:$0xff]   ;;  %v1379_v60 = vld [vmem:[#allocation6 + $0x360] ss:$16 sps:$4 sm:$0xff]   ;;  %v1410_v25 = vld [vmem:[#allocation6 + $0xa8] ss:$16 sps:$4 sm:$0xff]  }
  0x34   :  { %874 = vmatpush1.bf16.msra.mxu0 %v1342_v26  ;;  %v1380_v61 = vld [vmem:[#allocation6 + $0x144] ss:$16 sps:$4 sm:$0xff]   ;;  %v1384_v63 = vld [vmem:[#allocation6 + $0x140] ss:$16 sps:$4 sm:$0xff]   ;;  %v1413_v26 = vld [vmem:[#allocation6 + $0x2a8] ss:$16 sps:$4 sm:$0xff]  }
  0x35   :  { %915 = vmatpush1.bf16.msra.mxu1 %v1343_v27  ;;  %875 = vmatprep.subr.bf16.mxu0 %v1344_v28  ;;  %v1382_v62 = vld [vmem:[#allocation6 + $0x344] ss:$16 sps:$4 sm:$0xff]   ;;  %v1385_v0 = vld [vmem:[#allocation6 + $0x340] ss:$16 sps:$4 sm:$0xff]   ;;  %v1418_v27 = vld [vmem:[#allocation6 + $0x8c] ss:$16 sps:$4 sm:$0xff]  }
  0x36   :  { %916 = vmatprep.subr.bf16.mxu1 %v1346_v29  ;;  %v1386_v1 = vld [vmem:[#allocation6 + $0x124] ss:$16 sps:$4 sm:$0xff]   ;;  %v1390_v3 = vld [vmem:[#allocation6 + $0x120] ss:$16 sps:$4 sm:$0xff]   ;;  %v1421_v28 = vld [vmem:[#allocation6 + $0x28c] ss:$16 sps:$4 sm:$0xff]  }
  0x37   :  { %v1388_v2 = vld [vmem:[#allocation6 + $0x324] ss:$16 sps:$4 sm:$0xff]   ;;  %v1391_v6 = vld [vmem:[#allocation6 + $0x320] ss:$16 sps:$4 sm:$0xff]   ;;  %v1416_v29 = vld [vmem:[#allocation6 + $0x88] ss:$16 sps:$4 sm:$0xff]  }
  0x38   :  { %876 = vmatpush1.bf16.msra.mxu0 %v1348_v30  ;;  %v1392_v7 = vld [vmem:[#allocation6 + $0x104] ss:$16 sps:$4 sm:$0xff]   ;;  %v1396_v9 = vld [vmem:[#allocation6 + $0x100] ss:$16 sps:$4 sm:$0xff]   ;;  %v1419_v30 = vld [vmem:[#allocation6 + $0x288] ss:$16 sps:$4 sm:$0xff]  }
  0x39   :  { %917 = vmatpush1.bf16.msra.mxu1 %v1349_v31  ;;  %877 = vmatprep.subr.bf16.mxu0 %v1350_v32  ;;  %v1394_v8 = vld [vmem:[#allocation6 + $0x304] ss:$16 sps:$4 sm:$0xff]   ;;  %v1397_v12 = vld [vmem:[#allocation6 + $0x300] ss:$16 sps:$4 sm:$0xff]   ;;  %v1424_v31 = vld [vmem:[#allocation6 + $0x6c] ss:$16 sps:$4 sm:$0xff]  }
  0x3a   :  { %918 = vmatprep.subr.bf16.mxu1 %v1352_v33  ;;  %v1427_v32 = vld [vmem:[#allocation6 + $0x26c] ss:$16 sps:$4 sm:$0xff]   ;;  %v1422_v33 = vld [vmem:[#allocation6 + $0x68] ss:$16 sps:$4 sm:$0xff]  }
  0x3c   :  { %878 = vmatpush2.bf16.msra.mxu0 %v1354_v34  ;;  %v1425_v34 = vld [vmem:[#allocation6 + $0x268] ss:$16 sps:$4 sm:$0xff]  }
  0x3d   :  { %919 = vmatpush2.bf16.msra.mxu1 %v1355_v35  ;;  %879 = vmatprep.subr.bf16.mxu0 %v1356_v37  ;;  %v1430_v35 = vld [vmem:[#allocation6 + $0x4c] ss:$16 sps:$4 sm:$0xff]  }
  0x3e   :  { %920 = vmatprep.subr.bf16.mxu1 %v1358_v38  ;;  %v1433_v37 = vld [vmem:[#allocation6 + $0x24c] ss:$16 sps:$4 sm:$0xff]   ;;  %v1428_v38 = vld [vmem:[#allocation6 + $0x48] ss:$16 sps:$4 sm:$0xff]  }
  0x40   :  { %880 = vmatpush2.bf16.msra.mxu0 %v1360_v39  ;;  %v1431_v39 = vld [vmem:[#allocation6 + $0x248] ss:$16 sps:$4 sm:$0xff]  }
  0x41   :  { %921 = vmatpush2.bf16.msra.mxu1 %v1361_v41  ;;  %881 = vmatprep.subr.bf16.mxu0 %v1362_v42  ;;  %v1436_v41 = vld [vmem:[#allocation6 + $0x2c] ss:$16 sps:$4 sm:$0xff]  }
  0x42   :  { %922 = vmatprep.subr.bf16.mxu1 %v1364_v43  ;;  %v1439_v42 = vld [vmem:[#allocation6 + $0x22c] ss:$16 sps:$4 sm:$0xff]   ;;  %v1434_v43 = vld [vmem:[#allocation6 + $0x28] ss:$16 sps:$4 sm:$0xff]  }
  0x44   :  { %882 = vmatpush2.bf16.msra.mxu0 %v1366_v44  ;;  %v1437_v44 = vld [vmem:[#allocation6 + $0x228] ss:$16 sps:$4 sm:$0xff]  }
  0x45   :  { %923 = vmatpush2.bf16.msra.mxu1 %v1367_v45  ;;  %883 = vmatprep.subr.bf16.mxu0 %v1368_v48  ;;  %v1442_v45 = vld [vmem:[#allocation6 + $0xc] ss:$16 sps:$4 sm:$0xff]  }
  0x46   :  { %924 = vmatprep.subr.bf16.mxu1 %v1370_v49  ;;  %v1445_v48 = vld [vmem:[#allocation6 + $0x20c] ss:$16 sps:$4 sm:$0xff]   ;;  %v1440_v49 = vld [vmem:[#allocation6 + $0x8] ss:$16 sps:$4 sm:$0xff]  }
  0x48   :  { %884 = vmatpush2.bf16.msra.mxu0 %v1372_v51  ;;  %v1448_v51 = vld [vmem:[#allocation6 + $0x1ec] ss:$16 sps:$4 sm:$0xff]  }
  0x49   :  { %925 = vmatpush2.bf16.msra.mxu1 %v1373_v54  ;;  %885 = vmatprep.subr.bf16.mxu0 %v1374_v55  ;;  %v1449_v54 = vld [vmem:[#allocation6 + $0x3e8] ss:$16 sps:$4 sm:$0xff]   ;;  %v1454_v55 = vld [vmem:[#allocation6 + $0x1cc] ss:$16 sps:$4 sm:$0xff]  }
  0x4a   :  { %926 = vmatprep.subr.bf16.mxu1 %v1376_v56  ;;  %v1457_v56 = vld [vmem:[#allocation6 + $0x3cc] ss:$16 sps:$4 sm:$0xff]  }
  0x4c   :  { %886 = vmatpush2.bf16.msra.mxu0 %v1378_v59  ;;  %v1460_v59 = vld [vmem:[#allocation6 + $0x1ac] ss:$16 sps:$4 sm:$0xff]  }
  0x4d   :  { %927 = vmatpush2.bf16.msra.mxu1 %v1379_v60  ;;  %887 = vmatprep.subr.bf16.mxu0 %v1380_v61  ;;  %v1463_v60 = vld [vmem:[#allocation6 + $0x3ac] ss:$16 sps:$4 sm:$0xff]   ;;  %v1458_v61 = vld [vmem:[#allocation6 + $0x1a8] ss:$16 sps:$4 sm:$0xff]  }
  0x4e   :  { %928 = vmatprep.subr.bf16.mxu1 %v1382_v62  ;;  %v1461_v62 = vld [vmem:[#allocation6 + $0x3a8] ss:$16 sps:$4 sm:$0xff]  }
  0x50   :  { %888 = vmatpush2.bf16.msra.mxu0 %v1384_v63  ;;  %v1466_v63 = vld [vmem:[#allocation6 + $0x18c] ss:$16 sps:$4 sm:$0xff]  }
  0x51   :  { %929 = vmatpush2.bf16.msra.mxu1 %v1385_v0  ;;  %889 = vmatprep.subr.bf16.mxu0 %v1386_v1  ;;  %v1469_v0 = vld [vmem:[#allocation6 + $0x38c] ss:$16 sps:$4 sm:$0xff]   ;;  %v1464_v1 = vld [vmem:[#allocation6 + $0x188] ss:$16 sps:$4 sm:$0xff]  }
  0x52   :  { %930 = vmatprep.subr.bf16.mxu1 %v1388_v2  ;;  %v1467_v2 = vld [vmem:[#allocation6 + $0x388] ss:$16 sps:$4 sm:$0xff]  }
  0x54   :  { %890 = vmatpush2.bf16.msra.mxu0 %v1390_v3  ;;  %v1472_v3 = vld [vmem:[#allocation6 + $0x16c] ss:$16 sps:$4 sm:$0xff]  }
  0x55   :  { %931 = vmatpush2.bf16.msra.mxu1 %v1391_v6  ;;  %891 = vmatprep.subr.bf16.mxu0 %v1392_v7  ;;  %v1475_v6 = vld [vmem:[#allocation6 + $0x36c] ss:$16 sps:$4 sm:$0xff]   ;;  %v1470_v7 = vld [vmem:[#allocation6 + $0x168] ss:$16 sps:$4 sm:$0xff]  }
  0x56   :  { %932 = vmatprep.subr.bf16.mxu1 %v1394_v8  ;;  %v1473_v8 = vld [vmem:[#allocation6 + $0x368] ss:$16 sps:$4 sm:$0xff]  }
  0x58   :  { %892 = vmatpush2.bf16.msra.mxu0 %v1396_v9  ;;  %v1478_v9 = vld [vmem:[#allocation6 + $0x14c] ss:$16 sps:$4 sm:$0xff]  }
  0x59   :  { %933 = vmatpush2.bf16.msra.mxu1 %v1397_v12  ;;  %943 = vmatprep.subr.bf16.mxu0 %v1400_v13  ;;  %v1479_v12 = vld [vmem:[#allocation6 + $0x348] ss:$16 sps:$4 sm:$0xff]   ;;  %v1484_v13 = vld [vmem:[#allocation6 + $0x12c] ss:$16 sps:$4 sm:$0xff]  }
  0x5a   :  { %984 = vmatprep.subr.bf16.mxu1 %v1403_v14  ;;  %v1487_v14 = vld [vmem:[#allocation6 + $0x32c] ss:$16 sps:$4 sm:$0xff]  }
  0x5b   :  { %894 = vmatmul.mubr.bf16.vlgmr.msra.gmra.mxu0 %v1620_v15 }
  0x5c   :  { %935 = vmatmul.mubr.bf16.vlgmr.msra.gmra.mxu1 %v1622_v16  ;;  %944 = vmatpush1.bf16.msra.mxu0 %v1398_v17  ;;  %v1482_v17 = vld [vmem:[#allocation6 + $0x128] ss:$16 sps:$4 sm:$0xff]  }
  0x5d   :  { %985 = vmatpush1.bf16.msra.mxu1 %v1401_v18  ;;  %945 = vmatprep.subr.bf16.mxu0 %v1406_v19  ;;  %v1485_v18 = vld [vmem:[#allocation6 + $0x328] ss:$16 sps:$4 sm:$0xff]   ;;  %v1490_v19 = vld [vmem:[#allocation6 + $0x10c] ss:$16 sps:$4 sm:$0xff]  }
  0x5e   :  { %986 = vmatprep.subr.bf16.mxu1 %v1409_v20  ;;  %975 = vmatprep.mubr.bf16.mxu0 %v68_v57  ;;  %v1452_v57 = vld [vmem:[#allocation6 + $0x1c8] ss:$16 sps:$4 sm:$0xff]   ;;  %v1493_v20 = vld [vmem:[#allocation6 + $0x30c] ss:$16 sps:$4 sm:$0xff]  }
  0x5f   :  { %1016 = vmatprep.mubr.bf16.mxu1 %v70_v58  ;;  %v1455_v58 = vld [vmem:[#allocation6 + $0x3c8] ss:$16 sps:$4 sm:$0xff]  }
  0x60   :  { %946 = vmatpush1.bf16.msra.mxu0 %v1404_v21  ;;  %v1488_v21 = vld [vmem:[#allocation6 + $0x108] ss:$16 sps:$4 sm:$0xff]  }
  0x61   :  { %987 = vmatpush1.bf16.msra.mxu1 %v1407_v22  ;;  %947 = vmatprep.subr.bf16.mxu0 %v1412_v23  ;;  %v1491_v22 = vld [vmem:[#allocation6 + $0x308] ss:$16 sps:$4 sm:$0xff]   ;;  %v1041_v23 = vand.u32 127, %v47_v36 }
  0x62   :  { %988 = vmatprep.subr.bf16.mxu1 %v1415_v24  ;;  %v1630_v24 = vmul.u32 512, %v1606_v40 }
  0x64   :  { %948 = vmatpush1.bf16.msra.mxu0 %v1410_v25  ;;  %v1042_v25 = vadd.s32 128, %v1041_v23 }
  0x65   :  { %989 = vmatpush1.bf16.msra.mxu1 %v1413_v26  ;;  %949 = vmatprep.subr.bf16.mxu0 %v1418_v27  ;;  %v1048_v26 = vadd.s32 %v1630_v24, %v1041_v23  ;;  %v1636_v27 = vstv %s1052_s27 }
  0x66   :  { %990 = vmatprep.subr.bf16.mxu1 %v1421_v28  ;;  %v1049_v28 = vadd.s32 %v1630_v24, %v1042_v25 }
  0x68   :  { %950 = vmatpush1.bf16.msra.mxu0 %v1416_v29 }
  0x69   :  { %991 = vmatpush1.bf16.msra.mxu1 %v1419_v30  ;;  %951 = vmatprep.subr.bf16.mxu0 %v1424_v31 }
  0x6a   :  { %992 = vmatprep.subr.bf16.mxu1 %v1427_v32 }
  0x6c   :  { %952 = vmatpush1.bf16.msra.mxu0 %v1422_v33 }
  0x6d   :  { %993 = vmatpush1.bf16.msra.mxu1 %v1425_v34  ;;  %953 = vmatprep.subr.bf16.mxu0 %v1430_v35 }
  0x6e   :  { %994 = vmatprep.subr.bf16.mxu1 %v1433_v37 }
  0x70   :  { %954 = vmatpush1.bf16.msra.mxu0 %v1428_v38 }
  0x71   :  { %995 = vmatpush1.bf16.msra.mxu1 %v1431_v39  ;;  %955 = vmatprep.subr.bf16.mxu0 %v1436_v41  ;;  %v1644_v39 = vld [vmem:[%s1676_s3] sm:$0xf]  ;;  %s1573_s3 = smov [#allocation8]  }
  0x72   :  { %996 = vmatprep.subr.bf16.mxu1 %v1439_v42  ;;  %s1158_s29 = sshll.u32 %s1573_s3, 4  ;;  %s1159_s29 = int_to_ptr.vmem [resolvable:$true] %s1158_s29 }
  0x73   :  { %s1542_s30 = scalar_lea.vmem %s1159_s29, 64  ;;  %p1547_p11 = scmp.lt.s32.totalorder %s1159_s29, %s1159_s29 }
  0x74   :  { %956 = vmatpush1.bf16.msra.mxu0 %v1434_v43  ;;  %v844_v43 = vrot.slane %v1644_v39, %v49_v4  ;;  %p1543_p10 = scmp.ne.s32.totalorder %s1159_s29, %s1542_s30  ;;  %p1548_p12 = scmp.lt.s32.totalorder %s1542_s30, %s1542_s30 }
  0x75   :  { %997 = vmatpush1.bf16.msra.mxu1 %v1437_v44  ;;  %957 = vmatprep.subr.bf16.mxu0 %v1442_v45  ;;  %v848_v45 = vrot.slane %v1644_v39, %v53_v46 }
  0x76   :  { %998 = vmatprep.subr.bf16.mxu1 %v1445_v48  ;;  %p1549_p13 = por %p1548_p12, %p1547_p11 }
  0x78   :  { %958 = vmatpush1.bf16.msra.mxu0 %v1440_v49  ;;  %p1550_p0 = pnand %p1549_p13, %p1543_p10 }
  0x79   :  { %999 = vmatpush1.bf16.msra.mxu1 %v1443_v50  ;;  %959 = vmatprep.subr.bf16.mxu0 %v1448_v51 }
  0x7a   :  { %1000 = vmatprep.subr.bf16.mxu1 %v1451_v52 }
  0x7c   :  { %960 = vmatpush2.bf16.msra.mxu0 %v1446_v53 }
  0x7d   :  { %1001 = vmatpush2.bf16.msra.mxu1 %v1449_v54  ;;  %961 = vmatprep.subr.bf16.mxu0 %v1454_v55 }
  0x7e   :  { %1002 = vmatprep.subr.bf16.mxu1 %v1457_v56 }
  0x80   :  { %962 = vmatpush2.bf16.msra.mxu0 %v1452_v57 }
  0x81   :  { %1003 = vmatpush2.bf16.msra.mxu1 %v1455_v58  ;;  %963 = vmatprep.subr.bf16.mxu0 %v1460_v59 }
  0x82   :  { %1004 = vmatprep.subr.bf16.mxu1 %v1463_v60 }
  0x84   :  { %964 = vmatpush2.bf16.msra.mxu0 %v1458_v61 }
  0x85   :  { %1005 = vmatpush2.bf16.msra.mxu1 %v1461_v62  ;;  %965 = vmatprep.subr.bf16.mxu0 %v1466_v63 }
  0x86   :  { %1006 = vmatprep.subr.bf16.mxu1 %v1469_v0 }
  0x88   :  { %966 = vmatpush2.bf16.msra.mxu0 %v1464_v1 }
  0x89   :  { %1007 = vmatpush2.bf16.msra.mxu1 %v1467_v2  ;;  %967 = vmatprep.subr.bf16.mxu0 %v1472_v3 }
  0x8a   :  { %1008 = vmatprep.subr.bf16.mxu1 %v1475_v6 }
  0x8c   :  { %968 = vmatpush2.bf16.msra.mxu0 %v1470_v7 }
  0x8d   :  { %1009 = vmatpush2.bf16.msra.mxu1 %v1473_v8  ;;  %969 = vmatprep.subr.bf16.mxu0 %v1478_v9 }
  0x8e   :  { %1010 = vmatprep.subr.bf16.mxu1 %v1481_v10 }
  0x90   :  { %970 = vmatpush2.bf16.msra.mxu0 %v1476_v11 }
  0x91   :  { %1011 = vmatpush2.bf16.msra.mxu1 %v1479_v12  ;;  %971 = vmatprep.subr.bf16.mxu0 %v1484_v13  ;;  %v1043_v12 = vadd.s32 256, %v1041_v23 }
  0x92   :  { %1012 = vmatprep.subr.bf16.mxu1 %v1487_v14 }
  0x94   :  { %972 = vmatpush2.bf16.msra.mxu0 %v1482_v17 }
  0x95   :  { %1013 = vmatpush2.bf16.msra.mxu1 %v1485_v18  ;;  %973 = vmatprep.subr.bf16.mxu0 %v1490_v19  ;;  %v1044_v19 = vadd.s32 384, %v1041_v23 }
  0x96   :  { %1014 = vmatprep.subr.bf16.mxu1 %v1493_v20 }
  0x98   :  { %974 = vmatpush2.bf16.msra.mxu0 %v1488_v21 }
  0x99   :  { %1015 = vmatpush2.bf16.msra.mxu1 %v1491_v22  ;;  %v1050_v22 = vadd.s32 %v1630_v24, %v1043_v12 }
  0x9b   :  { %976 = vmatmul.mubr.bf16.vlgmr.msra.gmra.mxu0 %v1620_v15  ;;  %v1054_v15 = vadd.s32 %v1636_v27, %v1048_v26  ;;  %v1051_v26 = vadd.s32 %v1630_v24, %v1044_v19 }
  0x9c   :  { %1017 = vmatmul.mubr.bf16.vlgmr.msra.gmra.mxu1 %v1622_v16  ;;  %v1055_v16 = vadd.s32 %v1636_v27, %v1049_v28  ;;  %v1056_v28 = vadd.s32 %v1636_v27, %v1050_v22 }
  0x9d   :  { %v1058_v29 = vshrl.u32 %v1054_v15, 16 }
  0x9e   :  { %v1059_v30 = vshrl.u32 %v1055_v16, 16 }
  0x9f   :  { %v1062_v31 = vxor.u32 %v1058_v29, %v1054_v15  ;;  %v1057_v15 = vadd.s32 %v1636_v27, %v1051_v26  ;;  %v856_v27 = vrot.slane %v1644_v39, %v61_v47 }
  0xa0   :  { %v1063_v32 = vxor.u32 %v1059_v30, %v1055_v16  ;;  %v1060_v16 = vshrl.u32 %v1056_v28, 16 }
  0xa1   :  { %v1066_v33 = vmul.u32 2246822507, %v1062_v31  ;;  %v1061_v29 = vshrl.u32 %v1057_v15, 16 }
  0xa2   :  { %v1067_v34 = vmul.u32 2246822507, %v1063_v32  ;;  %v1064_v30 = vxor.u32 %v1060_v16, %v1056_v28 }
  0xa3   :  { %v1070_v35 = vshrl.u32 %v1066_v33, 13  ;;  %v1065_v31 = vxor.u32 %v1061_v29, %v1057_v15 }
  0xa4   :  { %v1071_v37 = vshrl.u32 %v1067_v34, 13  ;;  %v1068_v23 = vmul.u32 2246822507, %v1064_v30 }
  0xa5   :  { %v1074_v38 = vxor.u32 %v1070_v35, %v1066_v33  ;;  %v1069_v32 = vmul.u32 2246822507, %v1065_v31 }
  0xa6   :  { %v1075_v41 = vxor.u32 %v1071_v37, %v1067_v34  ;;  %v1072_v33 = vshrl.u32 %v1068_v23, 13 }
  0xa7   :  { %v1078_v42 = vmul.u32 3266489909, %v1074_v38  ;;  %v1073_v34 = vshrl.u32 %v1069_v32, 13 }
  0xa8   :  { %v1079_v44 = vmul.u32 3266489909, %v1075_v41  ;;  %v1076_v35 = vxor.u32 %v1072_v33, %v1068_v23  ;;  %v852_v41 = vrot.slane %v1644_v39, %v57_v5 }
  0xa9   :  { %v1082_v50 = vshrl.u32 %v1078_v42, 16  ;;  %v1077_v37 = vxor.u32 %v1073_v34, %v1069_v32 }
  0xaa   :  { %v1083_v54 = vshrl.u32 %v1079_v44, 16  ;;  %v1080_v38 = vmul.u32 3266489909, %v1076_v35 }
  0xab   :  { %v1086_v57 = vxor.u32 %v1082_v50, %v1078_v42  ;;  %v1081_v24 = vmul.u32 3266489909, %v1077_v37 }
  0xac   :  { %v1087_v4 = vxor.u32 %v1083_v54, %v1079_v44  ;;  %v1084_v44 = vshrl.u32 %v1080_v38, 16 }
  0xad   :  { %vm1090_vm0 = vcmp.ge.u32.totalorder %v1086_v57, 192049463  ;;  %v1085_v50 = vshrl.u32 %v1081_v24, 16 }
  0xae   :  { %vm1091_vm1 = vcmp.ge.u32.totalorder %v1087_v4, 192049463 }
  0xaf   :  { %v1089_v5 = vxor.u32 %v1085_v50, %v1081_v24 }
  0xb1   :  { %vm1093_vm3 = vcmp.ge.u32.totalorder %v1089_v5, 192049463 }
 0x11b   :  { %v895_v48 = vpop.f32.mrf.mxu0 }
 0x11c   :  { %v936_v49 = vpop.f32.mrf.mxu1  ;;  %v896_v51 = vadd.f32 %v895_v48, %v844_v43 }
 0x11d   :  { %v897_v52 = vpop.f32.mrf.mxu0 }
 0x11e   :  { %v938_v53 = vpop.f32.mrf.mxu1  ;;  %v937_v55 = vadd.f32 %v936_v49, %v896_v51  ;;  %v898_v56 = vadd.f32 %v897_v52, %v848_v45 }
 0x11f   :  { %v899_v58 = vpop.f32.mrf.mxu0 }
 0x120   :  { %v940_v59 = vpop.f32.mrf.mxu1  ;;  %v1029_v60 = vmul.f32 %v937_v55, %v937_v55  ;;  %v939_v61 = vadd.f32 %v938_v53, %v898_v56  ;;  %v1025_v14 = vmul.f32 0.5, %v937_v55  ;;  %v1088_v53 = vxor.u32 %v1084_v44, %v1080_v38 }
 0x121   :  { %v900_v62 = vpop.f32.mrf.mxu0 }
 0x122   :  { %v941_v63 = vpop.f32.mrf.mxu1  ;;  %v1033_v0 = vmul.f32 %v1029_v60, %v937_v55  ;;  %v1030_v1 = vmul.f32 %v939_v61, %v939_v61  ;;  %v1026_v17 = vmul.f32 0.5, %v939_v61  ;;  %vm1092_vm2 = vcmp.ge.u32.totalorder %v1088_v53, 192049463 }
 0x124   :  { %v1094_v46 = vmul.f32 1.046808, %v1033_v0  ;;  %v1034_v2 = vmul.f32 %v1030_v1, %v939_v61 }
 0x126   :  { %v1098_v3 = vsel %vm1090_vm0, %v1094_v46, 0.0  ;;  %v1095_v6 = vmul.f32 1.046808, %v1034_v2  ;;  %v1572_v46 = vmov 1966171168  }
 0x127   :  { %v1102_v7 = vmul.f32 0.7978846, %v1098_v3  ;;  %v1125_v2 = vunpack.c.l.s4 %v1572_v46 }
 0x128   :  { %v1099_v8 = vsel %vm1091_vm1, %v1095_v6, 0.0 }
 0x129   :  { %1494 = vtanh.f32 %v1102_v7  ;;  %v1103_v9 = vmul.f32 0.7978846, %v1099_v8  ;;  %v1126_v7 = vunpack.c.0.s8 %v1125_v2 }
 0x12b   :  { %1496 = vtanh.f32 %v1103_v9 }
 0x136   :  { %v1495_v10 = vpop.eup %1494 }
 0x137   :  { %v1110_v11 = vadd.f32 1.0, %v1495_v10 }
 0x138   :  { %v1497_v13 = vpop.eup %1496 }
 0x139   :  { %v1111_v18 = vadd.f32 1.0, %v1497_v13  ;;  %v1652_v20 = vmul.f32 %v1110_v11, %v1025_v14  ;;  %v1129_v14 = vsub.s32 %v1126_v7, %v1606_v40 }
 0x13b   :  { %v1654_v21 = vmul.f32 %v1111_v18, %v1026_v17 }
 0x13d   :  { %v1122_v25 = vcombine.low %v1652_v20, %v1654_v21 }
 0x13f   :  { %v1130_v18 = vrot.slane %v1122_v25, %v1129_v14 }
 0x15b   :  { %v977_v42 = vpop.f32.mrf.mxu0 }
 0x15c   :  { %v1018_v43 = vpop.f32.mrf.mxu1  ;;  %v978_v45 = vadd.f32 %v977_v42, %v852_v41 }
 0x15d   :  { %v979_v48 = vpop.f32.mrf.mxu0 }
 0x15e   :  { %v1020_v49 = vpop.f32.mrf.mxu1  ;;  %v1019_v51 = vadd.f32 %v1018_v43, %v978_v45  ;;  %v980_v52 = vadd.f32 %v979_v48, %v856_v27 }
 0x15f   :  { %v981_v54 = vpop.f32.mrf.mxu0 }
 0x160   :  { %v1022_v55 = vpop.f32.mrf.mxu1  ;;  %v1031_v56 = vmul.f32 %v1019_v51, %v1019_v51  ;;  %v1021_v57 = vadd.f32 %v1020_v49, %v980_v52  ;;  %v1027_v9 = vmul.f32 0.5, %v1019_v51 }
 0x161   :  { %v982_v58 = vpop.f32.mrf.mxu0 }
 0x162   :  { %v1023_v59 = vpop.f32.mrf.mxu1  ;;  %v1035_v60 = vmul.f32 %v1031_v56, %v1019_v51  ;;  %v1032_v61 = vmul.f32 %v1021_v57, %v1021_v57  ;;  %v1028_v10 = vmul.f32 0.5, %v1021_v57 }
 0x164   :  { %v1096_v47 = vmul.f32 1.046808, %v1035_v60  ;;  %v1036_v39 = vmul.f32 %v1032_v61, %v1021_v57 }
 0x166   :  { %v1100_v4 = vsel %vm1092_vm2, %v1096_v47, 0.0  ;;  %v1097_v62 = vmul.f32 1.046808, %v1036_v39 }
 0x167   :  { %v1104_v63 = vmul.f32 0.7978846, %v1100_v4 }
 0x168   :  { %v1101_v0 = vsel %vm1093_vm3, %v1097_v62, 0.0 }
 0x169   :  { %1498 = vtanh.f32 %v1104_v63  ;;  %v1105_v1 = vmul.f32 0.7978846, %v1101_v0 }
 0x16b   :  { %1500 = vtanh.f32 %v1105_v1 }
 0x176   :  { %v1499_v3 = vpop.eup %1498 }
 0x177   :  { %v1112_v6 = vadd.f32 1.0, %v1499_v3 }
 0x178   :  { %v1501_v8 = vpop.eup %1500 }
 0x179   :  { %v1113_v11 = vadd.f32 1.0, %v1501_v8  ;;  %v1116_v12 = vmul.f32 %v1112_v6, %v1027_v9 }
 0x17b   :  { %v1117_v13 = vmul.f32 %v1113_v11, %v1028_v10 }
 0x17d   :  { %v1123_v17 = vcombine.low %v1116_v12, %v1117_v13 }
 0x17f   :  { %v1137_v19 = vrot.slane %v1123_v17, %v1129_v14 }
 0x181   :  { %v1138_v20 = vcombine.low %v1130_v18, %v1137_v19 }
 0x183   :  { %v1145_v21 = vrot.slane %v1138_v20, %v1129_v14 }
 0x185   :  { %1151 = vst.msk [vmem:[#allocation8] sm:$0xf] %vm1149_vm4, %v1145_v21 }
 0x186   :  { %1553 = shalt.err (!%p1550_p0)
}
 0x187   :  { %1161 = dma.vmem_to_hbm [thread:$0]  %s1159_s29, 64, %s1677_s4, [#allocation5]  }
 0x188   :  { %1566 = dma.done.wait [#allocation5], 64  }
 0x189   :  { %1567 = vsyncadd [#allocation5], 4294967232 }
 0x18a   :  { %1165 = vsyncpa [#allocation4], 1 }
 0x18b   :  { %1166 = vsyncpa [#allocation7], 1 }
 0x18c   :  { %1167 = vsyncpa [#allocation5], 1 }

</bundles_post_ra>
